<compile_context>
chip_gen: v5e
topology: v5e:2x2
jax: 0.10.0
libtpu: 0.0.40
codegen_flags: <defaults>
</compile_context>

<pallas_src>
import functools

import jax
import jax.numpy as jnp
import numpy as np
from jax.experimental import pallas as pl
from jax.experimental.pallas import tpu as pltpu


def _round_up(x: int, m: int) -> int:
    return ((x + m - 1) // m) * m


# ----------------------------- Pallas kernel -----------------------------
def _sage_kernel(a_ref, hsrc_ref, hdst_ref, wn_ref, ws_ref, b_ref, o_ref,
                 neigh_acc, out_acc, *, apply_relu: bool):
    r = pl.program_id(1)
    k = pl.program_id(2)
    nr = pl.num_programs(1)
    nk = pl.num_programs(2)

    @pl.when((r == 0) & (k == 0))
    def _():
        out_acc[...] = jnp.zeros_like(out_acc)

    @pl.when(k == 0)
    def _():
        neigh_acc[...] = jnp.zeros_like(neigh_acc)

    # mean-aggregated neighbor features, accumulated over source tiles (bf16 MXU, f32 acc)
    neigh_acc[...] += jnp.dot(a_ref[0], hsrc_ref[0],
                              preferred_element_type=jnp.float32)

    # projections + bias + per-relation activation, hoisted out of the k reduction loop
    @pl.when(k == nk - 1)
    def _():
        contrib = (
            jnp.dot(neigh_acc[...].astype(jnp.bfloat16), wn_ref[0],
                    preferred_element_type=jnp.float32)
            + jnp.dot(hdst_ref[...], ws_ref[0],
                      preferred_element_type=jnp.float32)
            + b_ref[0]
        )
        if apply_relu:  # DGL SAGEConv applies its activation per relation, before the sum
            contrib = jnp.maximum(contrib, 0.0)
        out_acc[...] += contrib

    @pl.when((r == nr - 1) & (k == nk - 1))
    def _():
        o_ref[...] = out_acc[...].astype(o_ref.dtype)


def sage_hetero_dst(adjs, h_srcs, h_dst, w_neighs, w_selfs, biases, *,
                    apply_relu: bool, tm: int = 128, tk: int = 128):
    """All relations targeting one destination node type, fused in a single pallas_call.

    adjs[r]:     [Nd, Ns_r] row-normalized adjacency (mean aggregation)
    h_srcs[r]:   [Ns_r, din] source features of relation r
    h_dst:       [Nd, din]   destination features
    w_neighs[r], w_selfs[r]: [din, dout]; biases[r]: [dout]
    """
    R = len(adjs)
    nd, din = h_dst.shape
    dout = w_neighs[0].shape[1]

    nd_pad = _round_up(nd, tm)
    ns_pad = max(_round_up(a.shape[1], tk) for a in adjs)
    din_pad = _round_up(din, 128)
    dout_pad = _round_up(dout, 128)          # lane-dense output store even for dout == 1

    def pad2(x, rows, cols):
        return jnp.pad(x, ((0, rows - x.shape[0]), (0, cols - x.shape[1])))

    a_stack = jnp.stack([pad2(a, nd_pad, ns_pad) for a in adjs]).astype(jnp.bfloat16)
    hs_stack = jnp.stack([pad2(hs, ns_pad, din_pad) for hs in h_srcs]).astype(jnp.bfloat16)
    hd = pad2(h_dst, nd_pad, din_pad).astype(jnp.bfloat16)
    wn_stack = jnp.stack([pad2(w, din_pad, dout_pad) for w in w_neighs]).astype(jnp.bfloat16)
    ws_stack = jnp.stack([pad2(w, din_pad, dout_pad) for w in w_selfs]).astype(jnp.bfloat16)
    b_stack = jnp.stack([jnp.pad(b, (0, dout_pad - dout))[None, :] for b in biases]
                        ).astype(jnp.float32)                              # [R, 1, dout_pad]

    grid = (nd_pad // tm, R, ns_pad // tk)
    kernel = functools.partial(_sage_kernel, apply_relu=apply_relu)

    out = pl.pallas_call(
        kernel,
        out_shape=jax.ShapeDtypeStruct((nd_pad, dout_pad), jnp.float32),
        grid_spec=pltpu.PrefetchScalarGridSpec(
            num_scalar_prefetch=0,
            grid=grid,
            in_specs=[
                pl.BlockSpec((1, tm, tk), lambda i, r, k: (r, i, k)),             # A
                pl.BlockSpec((1, tk, din_pad), lambda i, r, k: (r, k, 0)),        # h_src
                pl.BlockSpec((tm, din_pad), lambda i, r, k: (i, 0)),              # h_dst
                pl.BlockSpec((1, din_pad, dout_pad), lambda i, r, k: (r, 0, 0)),  # W_neigh
                pl.BlockSpec((1, din_pad, dout_pad), lambda i, r, k: (r, 0, 0)),  # W_self
                pl.BlockSpec((1, 1, dout_pad), lambda i, r, k: (r, 0, 0)),        # bias
            ],
            out_specs=pl.BlockSpec((tm, dout_pad), lambda i, r, k: (i, 0)),
            scratch_shapes=[
                pltpu.VMEM((tm, din_pad), jnp.float32),    # neighbor accumulator
                pltpu.VMEM((tm, dout_pad), jnp.float32),   # cross-relation accumulator
            ],
        ),
        compiler_params=pltpu.CompilerParams(
            dimension_semantics=("parallel", "arbitrary", "arbitrary"),
            vmem_limit_bytes=64 * 1024 * 1024,
        ),
    )(a_stack, hs_stack, hd, wn_stack, ws_stack, b_stack)
    return out[:nd, :dout]


# --------------------------- model (plain-JAX glue) ---------------------------
def hetero_layer(rel_graph, rel_params, h, *, apply_relu):
    """DGL HeteroGraphConv({rel: SAGEConv}) with 'sum' cross-relation aggregation,
    fused per destination node type into one Pallas call."""
    by_dst = {}
    for rel, (stype, dtype_, A) in rel_graph.items():
        by_dst.setdefault(dtype_, []).append((rel, stype, A))

    out = {}
    for dtype_, rels in by_dst.items():
        adjs = [A for (_, _, A) in rels]
        h_srcs = [h[stype] for (_, stype, _) in rels]
        nd = adjs[0].shape[0]
        h_dst = h[dtype_][:nd]                       # h_dst = h[:num_dst_nodes]
        wns = [rel_params[rel][0] for (rel, _, _) in rels]
        wss = [rel_params[rel][1] for (rel, _, _) in rels]
        bs = [rel_params[rel][2] for (rel, _, _) in rels]
        out[dtype_] = sage_hetero_dst(adjs, h_srcs, h_dst, wns, wss, bs,
                                      apply_relu=apply_relu)
    return out


def binary_rgcn_forward(rel_graph, params, h, label_entity):
    n_layers = len(params)
    for l in range(n_layers):
        h = hetero_layer(rel_graph, params[l], h, apply_relu=(l != n_layers - 1))
    return jax.nn.sigmoid(h[label_entity])


def ref_forward(rel_graph, params, h, label_entity):
    """Pure-JAX f32 reference (no padding, no bf16, per-relation ReLU then sum)."""
    n_layers = len(params)
    for l in range(n_layers):
        out = {}
        for rel, (stype, dtype_, A) in rel_graph.items():
            wn, ws, b = params[l][rel]
            nd = A.shape[0]
            r = h[dtype_][:nd] @ ws + (A @ h[stype]) @ wn + b
            if l != n_layers - 1:
                r = jnp.maximum(r, 0.0)
            out[dtype_] = r if dtype_ not in out else out[dtype_] + r
        h = out
    return jax.nn.sigmoid(h[label_entity])


def init_params(key, rel_names, in_dim, h_dim, n_layers):
    """Deterministic synthetic params: per layer, per relation: (W_neigh, W_self, bias)."""
    dims = [in_dim] + [h_dim] * (n_layers - 1) + [1]
    params = []
    for l in range(n_layers):
        din, dout = dims[l], dims[l + 1]
        layer_p = {}
        for rel in rel_names:
            key, k1, k2, k3 = jax.random.split(key, 4)
            scale = 1.0 / jnp.sqrt(jnp.float32(din))
            layer_p[rel] = (
                jax.random.normal(k1, (din, dout), jnp.float32) * scale,
                jax.random.normal(k2, (din, dout), jnp.float32) * scale,
                jax.random.normal(k3, (dout,), jnp.float32) * 0.01,
            )
        params.append(layer_p)
    return params


# --------------------------------- main ---------------------------------
if __name__ == "__main__":
    key = jax.random.PRNGKey(0)

    # small synthetic heterogeneous graph: 2 node types, 3 relations (user also gets 2
    # inbound relations so the fused cross-relation accumulation path is exercised)
    N_USER, N_ITEM = 256, 192
    IN_DIM, H_DIM, N_LAYERS = 16, 64, 2
    label_entity = "user"
    rel_names = ["buys", "bought_by", "follows"]

    def norm_adj(k, nd, ns, p=0.1):
        a = jax.random.bernoulli(k, p, (nd, ns)).astype(jnp.float32)
        return a / jnp.maximum(a.sum(axis=1, keepdims=True), 1.0)

    key, ka1, ka2, ka3 = jax.random.split(key, 4)
    a_buys = norm_adj(ka1, N_ITEM, N_USER)   # user -> item
    a_bby = norm_adj(ka2, N_USER, N_ITEM)    # item -> user
    a_fol = norm_adj(ka3, N_USER, N_USER)    # user -> user

    # rel_graph: rel -> (src_type, dst_type, row-normalized adjacency [Nd, Ns])
    rel_graph = {
        "buys": ("user", "item", a_buys),
        "bought_by": ("item", "user", a_bby),
        "follows": ("user", "user", a_fol),
    }

    key, kf1, kf2 = jax.random.split(key, 3)
    h = {
        "user": jax.random.normal(kf1, (N_USER, IN_DIM), jnp.float32),
        "item": jax.random.normal(kf2, (N_ITEM, IN_DIM), jnp.float32),
    }

    key, kp = jax.random.split(key)
    params = init_params(kp, rel_names, IN_DIM, H_DIM, N_LAYERS)

    # TODO(synk): DGL neighbor-sampled blocks are modeled as full-graph dense blocks
    # (dst nodes == all nodes of each type); feat_drop dropout is an eval-mode no-op.
    out = binary_rgcn_forward(rel_graph, params, h, label_entity)
    out = jax.block_until_ready(out)

    ref = ref_forward(rel_graph, params, h, label_entity)

    assert out.shape == (N_USER, 1)
    assert bool(jnp.all(jnp.isfinite(out)))
    assert bool(jnp.all((out >= 0.0) & (out <= 1.0)))
    np.testing.assert_allclose(np.asarray(out), np.asarray(ref), atol=5e-2, rtol=0.0)
    print("KERNEL_OK")
</pallas_src>

<mosaic_0001>
module attributes {stable_mosaic.version = 11 : i64} {
  func.func @_sage_kernel(%arg0: i32, %arg1: i32, %arg2: i32, %arg3: memref<1x128x128xbf16, #tpu.memory_space<vmem>>, %arg4: memref<1x128x128xbf16, #tpu.memory_space<vmem>>, %arg5: memref<128x128xbf16, #tpu.memory_space<vmem>>, %arg6: memref<1x128x128xbf16, #tpu.memory_space<vmem>>, %arg7: memref<1x128x128xbf16, #tpu.memory_space<vmem>>, %arg8: memref<1x1x128xf32, #tpu.memory_space<vmem>>, %arg9: memref<128x128xf32, #tpu.memory_space<vmem>>, %arg10: memref<128x128xf32, #tpu.memory_space<vmem>>, %arg11: memref<128x128xf32, #tpu.memory_space<vmem>>) attributes {dimension_semantics = [#tpu.dimension_semantics<parallel>, #tpu.dimension_semantics<arbitrary>, #tpu.dimension_semantics<arbitrary>], iteration_bounds = array<i64: 2, 1, 2>, scalar_prefetch = 0 : i64, scratch_operands = 2 : i64, tpu.core_type = #tpu.core_type<tc>, window_params = [{transform_indices = @transform_0, window_bounds = array<i64: 1, 128, 128>}, {transform_indices = @transform_1, window_bounds = array<i64: 1, 128, 128>}, {transform_indices = @transform_2, window_bounds = array<i64: 128, 128>}, {transform_indices = @transform_3, window_bounds = array<i64: 1, 128, 128>}, {transform_indices = @transform_4, window_bounds = array<i64: 1, 128, 128>}, {transform_indices = @transform_5, window_bounds = array<i64: 1, 1, 128>}, {transform_indices = @transform_6, window_bounds = array<i64: 128, 128>}]} {
    %c0_i32 = arith.constant 0 : i32
    %0 = arith.cmpi eq, %arg1, %c0_i32 : i32
    %c0_i32_0 = arith.constant 0 : i32
    %1 = arith.cmpi eq, %arg2, %c0_i32_0 : i32
    %2 = arith.andi %0, %1 : i1
    %3 = arith.extui %2 : i1 to i32
    %c0_i32_1 = arith.constant 0 : i32
    %4 = arith.cmpi ne, %3, %c0_i32_1 : i32
    scf.if %4 {
      %cst_17 = arith.constant 0.000000e+00 : f32
      %24 = vector.broadcast %cst_17 : f32 to vector<128x128xf32>
      %c0_18 = arith.constant 0 : index
      %c0_19 = arith.constant 0 : index
      %25 = vector.load %arg11[%c0_18, %c0_19] : memref<128x128xf32, #tpu.memory_space<vmem>>, vector<128x128xf32>
      tpu.vector_store %arg11[%c0_18, %c0_19], %24 {strides = array<i32>} : memref<128x128xf32, #tpu.memory_space<vmem>>, vector<128x128xf32>,
    } else {
    }
    %c0_i32_2 = arith.constant 0 : i32
    %5 = arith.cmpi eq, %arg2, %c0_i32_2 : i32
    %6 = arith.extui %5 : i1 to i32
    %c0_i32_3 = arith.constant 0 : i32
    %7 = arith.cmpi ne, %6, %c0_i32_3 : i32
    scf.if %7 {
      %cst_17 = arith.constant 0.000000e+00 : f32
      %24 = vector.broadcast %cst_17 : f32 to vector<128x128xf32>
      %c0_18 = arith.constant 0 : index
      %c0_19 = arith.constant 0 : index
      %25 = vector.load %arg10[%c0_18, %c0_19] : memref<128x128xf32, #tpu.memory_space<vmem>>, vector<128x128xf32>
      tpu.vector_store %arg10[%c0_18, %c0_19], %24 {strides = array<i32>} : memref<128x128xf32, #tpu.memory_space<vmem>>, vector<128x128xf32>,
    } else {
    }
    %c0 = arith.constant 0 : index
    %c0_4 = arith.constant 0 : index
    %8 = vector.load %arg10[%c0, %c0_4] : memref<128x128xf32, #tpu.memory_space<vmem>>, vector<128x128xf32>
    %c0_5 = arith.constant 0 : index
    %c0_6 = arith.constant 0 : index
    %c0_7 = arith.constant 0 : index
    %9 = vector.load %arg3[%c0_5, %c0_6, %c0_7] : memref<1x128x128xbf16, #tpu.memory_space<vmem>>, vector<1x128x128xbf16>
    %10 = vector.shape_cast %9 : vector<1x128x128xbf16> to vector<128x128xbf16>
    %c0_8 = arith.constant 0 : index
    %c0_9 = arith.constant 0 : index
    %c0_10 = arith.constant 0 : index
    %11 = vector.load %arg4[%c0_8, %c0_9, %c0_10] : memref<1x128x128xbf16, #tpu.memory_space<vmem>>, vector<1x128x128xbf16>
    %12 = vector.shape_cast %11 : vector<1x128x128xbf16> to vector<128x128xbf16>
    %cst = arith.constant dense<0.000000e+00> : vector<128x128xf32>
    %13 = tpu.matmul %10, %12, %cst {dimension_numbers = #tpu.dot_dimension_numbers<[1], [0], [0], [1], [0, 0, 1, 1], [], []>} : vector<128x128xbf16>, vector<128x128xbf16>, vector<128x128xf32> -> vector<128x128xf32>
    %14 = arith.addf %8, %13 : vector<128x128xf32>
    %c0_11 = arith.constant 0 : index
    %c0_12 = arith.constant 0 : index
    %15 = vector.load %arg10[%c0_11, %c0_12] : memref<128x128xf32, #tpu.memory_space<vmem>>, vector<128x128xf32>
    tpu.vector_store %arg10[%c0_11, %c0_12], %14 {strides = array<i32>} : memref<128x128xf32, #tpu.memory_space<vmem>>, vector<128x128xf32>,
    %c1_i32 = arith.constant 1 : i32
    %16 = arith.cmpi eq, %arg2, %c1_i32 : i32
    %17 = arith.extui %16 : i1 to i32
    %c0_i32_13 = arith.constant 0 : i32
    %18 = arith.cmpi ne, %17, %c0_i32_13 : i32
    scf.if %18 {
      %c0_17 = arith.constant 0 : index
      %c0_18 = arith.constant 0 : index
      %24 = vector.load %arg10[%c0_17, %c0_18] : memref<128x128xf32, #tpu.memory_space<vmem>>, vector<128x128xf32>
      %25 = arith.truncf %24 : vector<128x128xf32> to vector<128x128xbf16>
      %c0_19 = arith.constant 0 : index
      %c0_20 = arith.constant 0 : index
      %c0_21 = arith.constant 0 : index
      %26 = vector.load %arg6[%c0_19, %c0_20, %c0_21] : memref<1x128x128xbf16, #tpu.memory_space<vmem>>, vector<1x128x128xbf16>
      %27 = vector.shape_cast %26 : vector<1x128x128xbf16> to vector<128x128xbf16>
      %cst_22 = arith.constant dense<0.000000e+00> : vector<128x128xf32>
      %28 = tpu.matmul %25, %27, %cst_22 {dimension_numbers = #tpu.dot_dimension_numbers<[1], [0], [0], [1], [0, 0, 1, 1], [], []>} : vector<128x128xbf16>, vector<128x128xbf16>, vector<128x128xf32> -> vector<128x128xf32>
      %c0_23 = arith.constant 0 : index
      %c0_24 = arith.constant 0 : index
      %29 = vector.load %arg5[%c0_23, %c0_24] : memref<128x128xbf16, #tpu.memory_space<vmem>>, vector<128x128xbf16>
      %c0_25 = arith.constant 0 : index
      %c0_26 = arith.constant 0 : index
      %c0_27 = arith.constant 0 : index
      %30 = vector.load %arg7[%c0_25, %c0_26, %c0_27] : memref<1x128x128xbf16, #tpu.memory_space<vmem>>, vector<1x128x128xbf16>
      %31 = vector.shape_cast %30 : vector<1x128x128xbf16> to vector<128x128xbf16>
      %cst_28 = arith.constant dense<0.000000e+00> : vector<128x128xf32>
      %32 = tpu.matmul %29, %31, %cst_28 {dimension_numbers = #tpu.dot_dimension_numbers<[1], [0], [0], [1], [0, 0, 1, 1], [], []>} : vector<128x128xbf16>, vector<128x128xbf16>, vector<128x128xf32> -> vector<128x128xf32>
      %33 = arith.addf %28, %32 : vector<128x128xf32>
      %c0_29 = arith.constant 0 : index
      %c0_30 = arith.constant 0 : index
      %c0_31 = arith.constant 0 : index
      %34 = vector.load %arg8[%c0_29, %c0_30, %c0_31] : memref<1x1x128xf32, #tpu.memory_space<vmem>>, vector<1x1x128xf32>
      %35 = vector.shape_cast %34 : vector<1x1x128xf32> to vector<1x128xf32>
      %36 = vector.broadcast %35 : vector<1x128xf32> to vector<128x128xf32>
      %37 = arith.addf %33, %36 : vector<128x128xf32>
      %cst_32 = arith.constant 0.000000e+00 : f32
      %38 = vector.broadcast %cst_32 : f32 to vector<128x128xf32>
      %39 = arith.maximumf %37, %38 : vector<128x128xf32>
      %c0_33 = arith.constant 0 : index
      %c0_34 = arith.constant 0 : index
      %40 = vector.load %arg11[%c0_33, %c0_34] : memref<128x128xf32, #tpu.memory_space<vmem>>, vector<128x128xf32>
      %41 = arith.addf %40, %39 : vector<128x128xf32>
      %c0_35 = arith.constant 0 : index
      %c0_36 = arith.constant 0 : index
      %42 = vector.load %arg11[%c0_35, %c0_36] : memref<128x128xf32, #tpu.memory_space<vmem>>, vector<128x128xf32>
      tpu.vector_store %arg11[%c0_35, %c0_36], %41 {strides = array<i32>} : memref<128x128xf32, #tpu.memory_space<vmem>>, vector<128x128xf32>,
    } else {
    }
    %c0_i32_14 = arith.constant 0 : i32
    %19 = arith.cmpi eq, %arg1, %c0_i32_14 : i32
    %c1_i32_15 = arith.constant 1 : i32
    %20 = arith.cmpi eq, %arg2, %c1_i32_15 : i32
    %21 = arith.andi %19, %20 : i1
    %22 = arith.extui %21 : i1 to i32
    %c0_i32_16 = arith.constant 0 : i32
    %23 = arith.cmpi ne, %22, %c0_i32_16 : i32
    scf.if %23 {
      %c0_17 = arith.constant 0 : index
      %c0_18 = arith.constant 0 : index
      %24 = vector.load %arg11[%c0_17, %c0_18] : memref<128x128xf32, #tpu.memory_space<vmem>>, vector<128x128xf32>
      %c0_19 = arith.constant 0 : index
      %c0_20 = arith.constant 0 : index
      %25 = vector.load %arg9[%c0_19, %c0_20] : memref<128x128xf32, #tpu.memory_space<vmem>>, vector<128x128xf32>
      tpu.vector_store %arg9[%c0_19, %c0_20], %24 {strides = array<i32>} : memref<128x128xf32, #tpu.memory_space<vmem>>, vector<128x128xf32>,
    } else {
    }
    return
  }
  func.func @transform_0(%arg0: i32, %arg1: i32, %arg2: i32) -> (i32, i32, i32) {
    %c0_i32 = arith.constant 0 : i32
    return %arg1, %arg0, %arg2 : i32, i32, i32
  }
  func.func @transform_1(%arg0: i32, %arg1: i32, %arg2: i32) -> (i32, i32, i32) {
    %c0_i32 = arith.constant 0 : i32
    %c0_i32_0 = arith.constant 0 : i32
    return %arg1, %arg2, %c0_i32 : i32, i32, i32
  }
  func.func @transform_2(%arg0: i32, %arg1: i32, %arg2: i32) -> (i32, i32) {
    %c0_i32 = arith.constant 0 : i32
    %c0_i32_0 = arith.constant 0 : i32
    return %arg0, %c0_i32 : i32, i32
  }
  func.func @transform_3(%arg0: i32, %arg1: i32, %arg2: i32) -> (i32, i32, i32) {
    %c0_i32 = arith.constant 0 : i32
    %c0_i32_0 = arith.constant 0 : i32
    %c0_i32_1 = arith.constant 0 : i32
    return %arg1, %c0_i32, %c0_i32_0 : i32, i32, i32
  }
  func.func @transform_4(%arg0: i32, %arg1: i32, %arg2: i32) -> (i32, i32, i32) {
    %c0_i32 = arith.constant 0 : i32
    %c0_i32_0 = arith.constant 0 : i32
    %c0_i32_1 = arith.constant 0 : i32
    return %arg1, %c0_i32, %c0_i32_0 : i32, i32, i32
  }
  func.func @transform_5(%arg0: i32, %arg1: i32, %arg2: i32) -> (i32, i32, i32) {
    %c0_i32 = arith.constant 0 : i32
    %c0_i32_0 = arith.constant 0 : i32
    %c0_i32_1 = arith.constant 0 : i32
    return %arg1, %c0_i32, %c0_i32_0 : i32, i32, i32
  }
  func.func @transform_6(%arg0: i32, %arg1: i32, %arg2: i32) -> (i32, i32) {
    %c0_i32 = arith.constant 0 : i32
    %c0_i32_0 = arith.constant 0 : i32
    return %arg0, %c0_i32 : i32, i32
  }
}

</mosaic_0001>

<bundles_post_ra>
// kernel: tpu_custom_call.1
= control target key start
LH: loop header
LB: loop body
LE: loop exit
PB: predicated region body
PF: predicated region fallthrough
CT: control target
= control target key end

     0   :  { %s2546_s0 = inlined_call_operand.hbm [shape: bf16[1,256,256], index: 0, kind: input, shape index: {}]   ;;  %s2547_s1 = inlined_call_operand.hbm [shape: bf16[1,256,128], index: 1, kind: input, shape index: {}]   ;;  %s2548_s2 = inlined_call_operand.hbm [shape: bf16[256,128], index: 2, kind: input, shape index: {}]   ;;  %s2549_s3 = inlined_call_operand.hbm [shape: bf16[1,128,128], index: 3, kind: input, shape index: {}]   ;;  %s2550_s4 = inlined_call_operand.hbm [shape: bf16[1,128,128], index: 4, kind: input, shape index: {}]   ;;  %s2551_s5 = inlined_call_operand.vmem [shape: f32[1,1,128], index: 5, kind: input, shape index: {}]   ;;  %s2552_s6 = inlined_call_operand.hbm [shape: f32[256,128], index: 6, kind: output, shape index: {}]  }
   0x1   :  { %2563 = sst [smem:[#allocation27_spill]] %s2546_s0 }
   0x2   :  { %2564 = sst [smem:[#allocation28_spill]] %s2547_s1 }
   0x3   :  { %2565 = sst [smem:[#allocation29_spill]] %s2549_s3 }
   0x4   :  { %2566 = sst [smem:[#allocation30_spill]] %s2550_s4 }
   0x5   :  { %2567 = sst [smem:[#allocation31_spill]] %s2551_s5 }
   0x6   :  { %2568 = sst [smem:[#allocation32_spill]] %s2552_s6 }
   0x7   :  { %11 = vsyncpa [#allocation5], 0 }
   0x8   :  { %13 = vsyncpa [#allocation5 + $0x1], 0 }
   0x9   :  { %14 = vsyncpa [#allocation8], 0 }
   0xa   :  { %16 = vsyncpa [#allocation8 + $0x1], 0 }
   0xb   :  { %17 = vsyncpa [#allocation11], 0 }
   0xc   :  { %18 = vsyncpa [#allocation6], 0 }
   0xd   :  { %20 = vsyncpa [#allocation6 + $0x1], 0  ;;  %s2141_s21 = smov 0   ;;  %s2143_s22 = smov 0  }
   0xe   :  { %s2145_s23 = smov 0   ;;  %s2147_s24 = smov 0  }
   0xf   :  { %s2149_s25 = smov 0   ;;  %s2151_s26 = smov 0  }
  0x10   :  { %s2153_s27 = smov 0   ;;  %s2155_s28 = smov 0  }
  0x11   :  { %s2157_s29 = smov 0   ;;  %s2159_s30 = smov 0  }
  0x12   :  { %s2161_s7 = smov 0   ;;  %s2163_s8 = smov 0  }
  0x13   :  { %s2165_s9 = smov 0   ;;  %s2167_s10 = smov 0  }
  0x14 LB: > { %2569 = sst [smem:[#allocation19_spill]] %s2059_s25  ;;  %s2212_s11 = sadd.s32 4294967295, %s2095_s10   ;;  %s2095_s10 = sphi %s2167_s10, %s26_s10   ;;  %s2091_s9 = sphi %s2165_s9, %s2617_s9   ;;  %s2087_s8 = sphi %s2163_s8, %s2606_s8   ;;  %s2083_s7 = sphi %s2161_s7, %s2616_s7   ;;  %s2079_s30 = sphi %s2159_s30, %s2605_s30   ;;  %s2075_s29 = sphi %s2157_s29, %s2615_s29   ;;  %s2071_s28 = sphi %s2155_s28, %s2614_s28   ;;  %s2067_s27 = sphi %s2153_s27, %s2613_s27   ;;  %s2063_s26 = sphi %s2151_s26, %s2612_s26   ;;  %s2059_s25 = sphi %s2149_s25, %s2611_s25   ;;  %s2055_s24 = sphi %s2147_s24, %s2602_s24   ;;  %s2051_s23 = sphi %s2145_s23, %s2610_s23   ;;  %s2047_s22 = sphi %s2143_s22, %s2609_s22   ;;  %s2043_s21 = sphi %s2141_s21, %s2608_s21  }
  0x15   : > { %2570 = sst [smem:[#allocation20_spill]] %s2079_s30  ;;  %p1345_p0 = scmp.ge.s32.totalorder %s2095_s10, 1 }
  0x16   : > { %2571 = sst [smem:[#allocation21_spill]] %s2083_s7  ;;  %p70_p1 = scmp.eq.s32.totalorder %s2212_s11, 0 }
  0x17   : > { %2572 = sst [smem:[#allocation22_spill]] %s2087_s8  ;;  %p225_p2 = scmp.eq.s32.totalorder %s2212_s11, 3 }
  0x18   : > { %p238_p3 = scmp.lt.s32.totalorder %s2095_s10, 5  ;;  %s2573_s3 = sld [smem:[#allocation29_spill]] }
  0x19   : > { %s2097_s16 = smov [#allocation10]   ;;  %s2553_s19 = smov 64  }
  0x1a   : > { %p2221_p4 = pnand %p1345_p0, %p238_p3  ;;  %s254_s17 = sshll.u32 %s2097_s16, 4  ;;  %s255_s17 = int_to_ptr.vmem [resolvable:$true] %s254_s17 }
  0x1b   : > { %s2555_s20 = smov 4   ;;  %s38_s12 = sadd.s32 1, %s2087_s8 }
  0x1c   : > { %p1638_p5 = pneg %p2221_p4  ;;  %s45_s13 = sadd.s32 1, %s2091_s9 }
  0x1d   : > { %p39_p7 = scmp.ge.s32.totalorder %s38_s12, 2  ;;  %p64_p8 = scmp.eq.s32.totalorder %s2095_s10, 0 }
  0x1e   : > { %s252_s14 = sshll.u32 %s2573_s3, 4  ;;  %p2229_p6 = pnand %p1638_p5, %p70_p1  ;;  %s253_s14 = int_to_ptr.hbm [resolvable:$true] %s252_s14 }
  0x1f   : > { %s84_s16 = sadd.s32 1, %s2063_s26  ;;  %p91_p9 = scmp.ne.s32.totalorder %s2063_s26, %s2059_s25 }
  0x20   : > { %1641 = dma.hbm_to_vmem [thread:$0]  (!%p2229_p6), %s253_s14, 1024, %s255_s17, [#allocation11], %s2553_s19, %s2553_s19, %s2555_s20  }
  0x21   : > { %s2619_s12 = smov (%p39_p7, %s38_s12), 0  ;;  %s2621_s13 = smov (!%p39_p7, %s45_s13), %s2091_s9 }
  0x22   : > { %2576 = sst [smem:[#allocation23_spill]] %s2619_s12  ;;  %s52_s3 = ssub.s32 %s2087_s8, %s2619_s12 }
  0x23   : > { %p2251_p10 = por %p91_p9, %p64_p8  ;;  %p47_p11 = scmp.ge.s32.totalorder %s2621_s13, 2 }
  0x24   : > { %p82_p12 = scmp.eq.s32.totalorder %s52_s3, 0  ;;  %p97_p13 = scmp.ne.s32.totalorder %s2059_s25, %s2055_s24 }
  0x25   : > { %p1661_p0 = scmp.lt.s32.totalorder %s2095_s10, 4  ;;  %s2623_s13 = smov (%p47_p11, %s2621_s13), 0 }
  0x26   : > { %2578 = sst [smem:[#allocation24_spill]] %s2623_s13  ;;  %s2265_s19 = ssub.s32 %s2091_s9, %s2623_s13 }
  0x27   : > { %s2261_s17 = scalar_select %p82_p12, %s2063_s26, %s84_s16  }
  0x28   : > { %p2269_p3 = por %p97_p13, %p70_p1  ;;  %s53_s12 = sor.u32 %s52_s3, %s2265_s19 }
  0x29   : > { %2579 = sst [smem:[#allocation25_spill]] %s2261_s17  ;;  %p108_p5 = scmp.eq.s32.totalorder %s2265_s19, 0 }
  0x2a   : > { %p2275_p7 = scmp.eq.s32.totalorder %s53_s12, 0  ;;  %s317_s6 = sand.u32 1, %s2095_s10  }
  0x2b   : > { %s319_s16 = sand.u32 1, %s2063_s26   ;;  %s1537_s7 = sshll.u32 %s2087_s8, 6 }
  0x2c   : > { %s1354_s17 = sshll.u32 %s319_s16, 6  ;;  %s2582_s1 = sld [smem:[#allocation28_spill]] }
  0x2d   : > { %s321_s3 = scalar_lea.vmem [#allocation7], %s1354_s17  ;;  %p1649_p9 = pnand %p1661_p0, %p2251_p10 }
  0x2e   : > { %s331_s12 = sshll.u32 %s321_s3, 4  ;;  %s2583_s4 = sld [smem:[#allocation30_spill]]  ;;  %s332_s12 = int_to_ptr.vmem [resolvable:$true] %s331_s12 }
  0x2f   : > { %s2292_s16 = scalar_lea.sflag [#allocation8], %s317_s6  ;;  %s2584_s3 = smov 4  }
  0x30   : > { %s56_s14 = sadd.s32 1, %s2075_s29  ;;  %p63_p10 = scmp.ne.s32.totalorder %s2075_s29, %s2071_s28 }
  0x31   : > { %s2307_s5 = scalar_select %p2275_p7, %s2075_s29, %s56_s14  }
  0x32   : > { %s328_s30 = scalar_lea.hbm %s2582_s1, %s1537_s7  ;;  %s2585_s1 = smov 64  }
  0x33   : > { %s329_s25 = sshll.u32 %s328_s30, 4  ;;  %s2100_s30 = smov [#allocation12]   ;;  %s330_s25 = int_to_ptr.hbm [resolvable:$true] %s329_s25 }
  0x34   : > { %s269_s7 = sshll.u32 %s2583_s4, 4  ;;  %s271_s17 = sshll.u32 %s2100_s30, 4  ;;  %s270_s7 = int_to_ptr.hbm [resolvable:$true] %s269_s7  ;;  %s272_s17 = int_to_ptr.vmem [resolvable:$true] %s271_s17 }
  0x35   : > { %1651 = dma.hbm_to_vmem [thread:$0]  (!%p1649_p9), %s330_s25, 1024, %s332_s12, %s2292_s16, %s2585_s1, %s2585_s1, %s2584_s3  }
  0x36   : > { %1644 = dma.hbm_to_vmem [thread:$0]  (!%p2229_p6), %s270_s7, 1024, %s272_s17, [#allocation11], %s2585_s1, %s2585_s1, %s2584_s3  }
  0x37   : > { %2586 = sst [smem:[#allocation26_spill]] %s2307_s5  ;;  %p69_p11 = scmp.ne.s32.totalorder %s2071_s28, %s2067_s27 }
  0x38   : > { %s291_s6 = sand.u32 1, %s2075_s29   ;;  %s1536_s13 = sshll.u32 %s2091_s9, 5 }
  0x39   : > { %p65_p12 = por %p64_p8, %p63_p10  ;;  %p2319_p13 = por %p70_p1, %p69_p11 }
  0x3a   : > { %s1350_s18 = sshll.u32 %s291_s6, 6  ;;  %s300_s24 = sadd.s32 %s2087_s8, %s1536_s13 }
  0x3b   : > { %s1353_s12 = sshll.u32 %s300_s24, 2  ;;  %s295_s27 = scalar_lea.vmem [#allocation4], %s1350_s18 }
  0x3c   : > { %s307_s7 = sshll.u32 %s295_s27, 4  ;;  %s2588_s0 = sld [smem:[#allocation27_spill]]  ;;  %s308_s7 = int_to_ptr.vmem [resolvable:$true] %s307_s7 }
  0x3d   : > { %p1646_p6 = pnand %p1661_p0, %p65_p12  ;;  %s292_s13 = scalar_lea.sflag [#allocation5], %s291_s6 }
  0x3e   : > { %s2101_s8 = smov 128   ;;  %s1344_s18 = sadd.s32 4294967294, %s2095_s10  }
  0x3f   : > { %s110_s24 = sadd.s32 1, %s2051_s23  ;;  %p117_p7 = scmp.ne.s32.totalorder %s2051_s23, %s2047_s22 }
  0x40   : > { %s2338_s27 = scalar_select %p108_p5, %s2051_s23, %s110_s24  }
  0x41   : > { %p2342_p9 = por %p117_p7, %p64_p8  ;;  %p123_p10 = scmp.ne.s32.totalorder %s2047_s22, %s2043_s21 }
  0x42   : > { %s304_s14 = scalar_lea.hbm %s2588_s0, %s1353_s12  ;;  %p2350_p11 = por %p225_p2, %p117_p7 }
  0x43   : > { %s305_s4 = sshll.u32 %s304_s14, 4  ;;  %p231_p12 = scmp.eq.s32.totalorder %s1344_s18, 3  ;;  %s306_s4 = int_to_ptr.hbm [resolvable:$true] %s305_s4 }
  0x44   : > { %1648 = dma.hbm_to_vmem [thread:$0]  (!%p1646_p6), %s306_s4, 1024, %s308_s7, %s292_s13, %s2101_s8, %s2585_s1, %s2584_s3  }
  0x45   : > { %p2356_p6 = por %p123_p10, %p70_p1  ;;  %s343_s8 = sand.u32 1, %s2051_s23  }
  0x46   : > { %p2361_p5 = por %p231_p12, %p123_p10  ;;  %s1357_s7 = sshll.u32 %s343_s8, 6 }
  0x47   : > { %s1538_s30 = sshll.u32 %s2091_s9, 6  ;;  %s345_s24 = scalar_lea.vmem [#allocation9], %s1357_s7 }
  0x48   : > { %s350_s13 = scalar_lea.hbm %s2548_s2, %s1538_s30  ;;  %s353_s0 = sshll.u32 %s345_s24, 4  ;;  %s354_s0 = int_to_ptr.vmem [resolvable:$true] %s353_s0 }
  0x49   : > { %s351_s5 = sshll.u32 %s350_s13, 4  ;;  %p1652_p2 = pnand %p1661_p0, %p2342_p9  ;;  %s352_s5 = int_to_ptr.hbm [resolvable:$true] %s351_s5 }
  0x4a   : > { %365 = sbr.rel (%p2221_p4) target bundleno = 612 (0x264), region = 44  ;;  %s367_s18 = sand.u32 (!%p2221_p4), 1, %s2071_s28  }
  0x4b   : > { %1654 = dma.hbm_to_vmem [thread:$0]  (!%p1652_p2), %s352_s5, 1024, %s354_s0, %s2292_s16, %s2585_s1, %s2585_s1, %s2584_s3  }
  0x4c   : > { %s1361_s8 = sshll.u32 (!%p2221_p4), %s367_s18, 6  ;;  %s368_s30 = scalar_lea.sflag (!%p2221_p4), [#allocation5], %s367_s18 }
  0x4d   : > { %s2380_s7 = scalar_lea.vmem (!%p2221_p4), [#allocation4], %s1361_s8 }
  0x4f   : > { %2022 = dma.done.wait (%p2319_p13), %s368_s30, 1024  }
  0x50   : > { %2024 = vsyncadd (%p2319_p13), %s368_s30, 4294966272  ;;  %s2593_s12 = sld [smem:[#allocation19_spill]]  ;;  %s377_s17 = sand.u32 1, %s2212_s11  }
  0x51   : > { %s378_s15 = scalar_lea.sflag [#allocation8], %s377_s17 }
  0x56   : > { %s379_s0 = sand.u32 1, %s2593_s12  }
  0x57   : > { %s1362_s1 = sshll.u32 %s379_s0, 6 }
  0x58   : > { %s2388_s16 = scalar_lea.vmem [#allocation7], %s1362_s1 }
  0x59   : > { %2026 = dma.done.wait (%p2269_p3), %s378_s15, 1024  }
  0x5a   : > { %2028 = vsyncadd (%p2269_p3), %s378_s15, 4294966272  ;;  %s2395_s3 = sand.u32 1, %s2047_s22  }
  0x5b   : > { %s1363_s5 = sshll.u32 %s2395_s3, 6 }
  0x5c   : > { %s2398_s25 = scalar_lea.vmem [#allocation9], %s1363_s5 }
  0x5d   : > { %2030 = dma.done.wait (%p2356_p6), %s378_s15, 1024  }
  0x5e   : > { %2032 = vsyncadd (%p2356_p6), %s378_s15, 4294966272 }
  0x5f   : > { %2034 = dma.done.wait (%p70_p1), [#allocation11], 2048  }
  0x60   : > { %2036 = vsyncadd (%p70_p1), [#allocation11], 4294965248  ;;  %s2594_s20 = sld [smem:[#allocation20_spill]]  ;;  %s1366_s14 = sshll.u32 %s2395_s3, 7 }
  0x61   : > { %s2410_s13 = scalar_lea.vmem [#allocation13], %s1366_s14 }
  0x66   : > { %p452_p4 = scmp.eq.s32.totalorder %s2594_s20, 0 }
  0x67   : > { %v2102_v0 = vmov (%p452_p4), 0.0  }
  0x68   : > { %456 = sbr.rel (!%p452_p4) target bundleno = 120 (0x78), region = 68  ;;  %457 = vst [vmem:[#allocation3 + $0x28] sm:$0xff] (%p452_p4), %v2102_v0 }
  0x69   : > { %458 = vst [vmem:[#allocation3 + $0x68] sm:$0xff] (%p452_p4), %v2102_v0 }
  0x6a   : > { %459 = vst [vmem:[#allocation3 + $0x10] sm:$0xff] (%p452_p4), %v2102_v0 }
  0x6b   : > { %460 = vst [vmem:[#allocation3 + $0x40] sm:$0xff] (%p452_p4), %v2102_v0 }
  0x6c   : > { %461 = vst [vmem:[#allocation3 + $0x48] sm:$0xff] (%p452_p4), %v2102_v0 }
  0x6d   : > { %462 = vst [vmem:[#allocation3 + $0x30] sm:$0xff] %v2102_v0 }
  0x6e   : > { %463 = vst [vmem:[#allocation3 + $0x70] sm:$0xff] %v2102_v0 }
  0x6f   : > { %464 = vst [vmem:[#allocation3 + $0x38] sm:$0xff] %v2102_v0 }
  0x70   : > { %465 = vst [vmem:[#allocation3 + $0x20] sm:$0xff] %v2102_v0 }
  0x71   : > { %466 = vst [vmem:[#allocation3 + $0x78] sm:$0xff] %v2102_v0 }
  0x72   : > { %467 = vst [vmem:[#allocation3 + $0x18] sm:$0xff] %v2102_v0 }
  0x73   : > { %468 = vst [vmem:[#allocation3 + $0x58] sm:$0xff] %v2102_v0 }
  0x74   : > { %469 = vst [vmem:[#allocation3] sm:$0xff] %v2102_v0 }
  0x75   : > { %470 = vst [vmem:[#allocation3 + $0x8] sm:$0xff] %v2102_v0 }
  0x76   : > { %471 = vst [vmem:[#allocation3 + $0x60] sm:$0xff] %v2102_v0 }
  0x77   : > { %472 = vst [vmem:[#allocation3 + $0x50] sm:$0xff] %v2102_v0 }
  0x78 PF: > { %s2595_s11 = sld [smem:[#allocation20_spill]] }
  0x7e   : > { %p1368_p1 = scmp.ne.s32.totalorder %s2595_s11, 0 }
  0x80   : > { %475 = sbr.rel (%p1368_p1) target bundleno = 150 (0x96), region = 72 }
  0x85   : > { %v2103_v1 = vmov 0.0  }
  0x86   : > { %476 = vst [vmem:[#allocation2 + $0x30] sm:$0xff] %v2103_v1 }
  0x87   : > { %477 = vst [vmem:[#allocation2] sm:$0xff] %v2103_v1 }
  0x88   : > { %478 = vst [vmem:[#allocation2 + $0x58] sm:$0xff] %v2103_v1 }
  0x89   : > { %479 = vst [vmem:[#allocation2 + $0x18] sm:$0xff] %v2103_v1 }
  0x8a   : > { %480 = vst [vmem:[#allocation2 + $0x50] sm:$0xff] %v2103_v1 }
  0x8b   : > { %481 = vst [vmem:[#allocation2 + $0x68] sm:$0xff] %v2103_v1 }
  0x8c   : > { %482 = vst [vmem:[#allocation2 + $0x8] sm:$0xff] %v2103_v1 }
  0x8d   : > { %483 = vst [vmem:[#allocation2 + $0x48] sm:$0xff] %v2103_v1 }
  0x8e   : > { %484 = vst [vmem:[#allocation2 + $0x40] sm:$0xff] %v2103_v1 }
  0x8f   : > { %485 = vst [vmem:[#allocation2 + $0x20] sm:$0xff] %v2103_v1 }
  0x90   : > { %486 = vst [vmem:[#allocation2 + $0x10] sm:$0xff] %v2103_v1 }
  0x91   : > { %487 = vst [vmem:[#allocation2 + $0x38] sm:$0xff] %v2103_v1 }
  0x92   : > { %488 = vst [vmem:[#allocation2 + $0x60] sm:$0xff] %v2103_v1 }
  0x93   : > { %489 = vst [vmem:[#allocation2 + $0x70] sm:$0xff] %v2103_v1 }
  0x94   : > { %490 = vst [vmem:[#allocation2 + $0x78] sm:$0xff] %v2103_v1 }
  0x95   : > { %491 = vst [vmem:[#allocation2 + $0x28] sm:$0xff] %v2103_v1 }
  0x96 PF: > { %v1555_v2 = vld [vmem:[%s2388_s16 + $0x38] sm:$0xff]  ;;  %v1554_v3 = vld [vmem:[%s2388_s16 + $0x30] sm:$0xff]  ;;  %v1553_v4 = vld [vmem:[%s2388_s16 + $0x28] sm:$0xff]  ;;  %s2596_s4 = sld [smem:[#allocation20_spill]] }
  0x97   : > { %636 = vmatpush.bf16.msra.mxu0 %v1555_v2  ;;  %1582 = vmatpush.bf16.msra.mxu1 %v1555_v2  ;;  %v1552_v5 = vld [vmem:[%s2388_s16 + $0x20] sm:$0xff]  ;;  %v1551_v6 = vld [vmem:[%s2388_s16 + $0x18] sm:$0xff]  ;;  %v1550_v7 = vld [vmem:[%s2388_s16 + $0x10] sm:$0xff] }
  0x98   : > { %1583 = vmatpush.bf16.msra.mxu2 %v1555_v2  ;;  %1584 = vmatpush.bf16.msra.mxu3 %v1555_v2  ;;  %v1549_v8 = vld [vmem:[%s2388_s16 + $0x8] sm:$0xff]  ;;  %v1548_v9 = vld [vmem:[%s2388_s16] sm:$0xff]  ;;  %v1542_v11 = vld [vmem:[%s2380_s7 + $0x10] sm:$0xff] }
  0x99   : > { %v1540_v10 = vld [vmem:[%s2380_s7] sm:$0xff]  ;;  %v1546_v13 = vld [vmem:[%s2380_s7 + $0x30] sm:$0xff]  ;;  %v1541_v14 = vld [vmem:[%s2380_s7 + $0x8] sm:$0xff] }
  0x9a   : > { %v1544_v12 = vld [vmem:[%s2380_s7 + $0x20] sm:$0xff]  ;;  %v1543_v15 = vld [vmem:[%s2380_s7 + $0x18] sm:$0xff]  ;;  %v1545_v16 = vld [vmem:[%s2380_s7 + $0x28] sm:$0xff] }
  0x9b   : > { %637 = vmatpush.bf16.msra.mxu0 %v1554_v3  ;;  %1585 = vmatpush.bf16.msra.mxu1 %v1554_v3  ;;  %v1547_v17 = vld [vmem:[%s2380_s7 + $0x38] sm:$0xff]  ;;  %v492_v18 = vld [vmem:[#allocation2 + $0x30] sm:$0xff]  ;;  %v500_v24 = vld [vmem:[#allocation2 + $0x40] sm:$0xff] }
  0x9c   : > { %1586 = vmatpush.bf16.msra.mxu2 %v1554_v3  ;;  %1587 = vmatpush.bf16.msra.mxu3 %v1554_v3  ;;  %p717_p8 = scmp.eq.s32.totalorder %s2596_s4, 1  ;;  %v496_v19 = vld [vmem:[#allocation2 + $0x50] sm:$0xff]  ;;  %v504_v25 = vld [vmem:[#allocation2 + $0x60] sm:$0xff]  ;;  %v497_v27 = vld [vmem:[#allocation2 + $0x68] sm:$0xff]  ;;  %p1433_p0 = scmp.ne.s32.totalorder %s2596_s4, 1 }
  0x9d   : > { %v493_v26 = vld [vmem:[#allocation2] sm:$0xff]  ;;  %v505_v37 = vld [vmem:[#allocation2 + $0x70] sm:$0xff]  ;;  %v494_v38 = vld [vmem:[#allocation2 + $0x58] sm:$0xff]  ;;  %s2597_s8 = sld [smem:[#allocation31_spill]] (!%p1433_p0) }
  0x9e   : > { %v501_v36 = vld [vmem:[#allocation2 + $0x20] sm:$0xff]  ;;  %v498_v39 = vld [vmem:[#allocation2 + $0x8] sm:$0xff]  ;;  %v502_v48 = vld [vmem:[#allocation2 + $0x10] sm:$0xff] }
  0x9f   : > { %638 = vmatpush.bf16.msra.mxu0 %v1553_v4  ;;  %1588 = vmatpush.bf16.msra.mxu1 %v1553_v4  ;;  %v506_v49 = vld [vmem:[#allocation2 + $0x78] sm:$0xff]  ;;  %v499_v51 = vld [vmem:[#allocation2 + $0x48] sm:$0xff] }
  0xa0   : > { %1589 = vmatpush.bf16.msra.mxu2 %v1553_v4  ;;  %1590 = vmatpush.bf16.msra.mxu3 %v1553_v4  ;;  %v495_v50 = vld [vmem:[#allocation2 + $0x18] sm:$0xff]  ;;  %v507_v61 = vld [vmem:[#allocation2 + $0x28] sm:$0xff] }
  0xa1   : > { %v503_v60 = vld [vmem:[#allocation2 + $0x38] sm:$0xff] }
  0xa3   : > { %639 = vmatpush.bf16.msra.mxu0 %v1552_v5  ;;  %1591 = vmatpush.bf16.msra.mxu1 %v1552_v5 }
  0xa4   : > { %1592 = vmatpush.bf16.msra.mxu2 %v1552_v5  ;;  %1593 = vmatpush.bf16.msra.mxu3 %v1552_v5 }
  0xa7   : > { %640 = vmatpush.bf16.msra.mxu0 %v1551_v6  ;;  %1594 = vmatpush.bf16.msra.mxu1 %v1551_v6 }
  0xa8   : > { %1595 = vmatpush.bf16.msra.mxu2 %v1551_v6  ;;  %1596 = vmatpush.bf16.msra.mxu3 %v1551_v6 }
  0xab   : > { %641 = vmatpush.bf16.msra.mxu0 %v1550_v7  ;;  %1597 = vmatpush.bf16.msra.mxu1 %v1550_v7 }
  0xac   : > { %1598 = vmatpush.bf16.msra.mxu2 %v1550_v7  ;;  %1599 = vmatpush.bf16.msra.mxu3 %v1550_v7 }
  0xaf   : > { %642 = vmatpush.bf16.msra.mxu0 %v1549_v8  ;;  %1600 = vmatpush.bf16.msra.mxu1 %v1549_v8 }
  0xb0   : > { %1601 = vmatpush.bf16.msra.mxu2 %v1549_v8  ;;  %1602 = vmatpush.bf16.msra.mxu3 %v1549_v8 }
  0xb3   : > { %643 = vmatpush.bf16.msra.mxu0 %v1548_v9  ;;  %1603 = vmatpush.bf16.msra.mxu1 %v1548_v9 }
  0xb4   : > { %1604 = vmatpush.bf16.msra.mxu2 %v1548_v9  ;;  %1605 = vmatpush.bf16.msra.mxu3 %v1548_v9 }
  0xb6   : > { %644 = vmatmul.bf16.vlgmr.msra.gmra.mxu0 %v1540_v10  ;;  %654 = vmatmul.bf16.vlgmr.msra.gmra.mxu1 %v1542_v11 }
  0xb7   : > { %664 = vmatmul.bf16.vlgmr.msra.gmra.mxu2 %v1544_v12  ;;  %674 = vmatmul.bf16.vlgmr.msra.gmra.mxu3 %v1546_v13 }
  0xc6   : > { %649 = vmatmul.bf16.gmra.mxu0 %v1541_v14  ;;  %659 = vmatmul.bf16.gmra.mxu1 %v1543_v15 }
  0xc7   : > { %669 = vmatmul.bf16.gmra.mxu2 %v1545_v16  ;;  %679 = vmatmul.bf16.gmra.mxu3 %v1547_v17 }
 0x133   : > { %v645_v20 = vpop.f32.mrf.mxu0  ;;  %v655_v21 = vpop.f32.mrf.mxu1 }
 0x134   : > { %v685_v22 = vadd.f32 %v645_v20, %v492_v18  ;;  %v689_v23 = vadd.f32 %v655_v21, %v496_v19 }
 0x136   : > { %701 = vst [vmem:[#allocation2 + $0x30] sm:$0xff] %v685_v22 }
 0x137   : > { %705 = vst [vmem:[#allocation2 + $0x50] sm:$0xff] %v689_v23 }
 0x13a   : > { %v665_v28 = vpop.f32.mrf.mxu2  ;;  %v675_v29 = vpop.f32.mrf.mxu3 }
 0x13b   : > { %v693_v30 = vadd.f32 %v665_v28, %v500_v24  ;;  %v697_v31 = vadd.f32 %v675_v29, %v504_v25  ;;  %v647_v32 = vpop.f32.mrf.mxu0  ;;  %v657_v33 = vpop.f32.mrf.mxu1 }
 0x13c   : > { %v686_v34 = vadd.f32 %v647_v32, %v493_v26  ;;  %v690_v35 = vadd.f32 %v657_v33, %v497_v27 }
 0x13d   : > { %709 = vst [vmem:[#allocation2 + $0x40] sm:$0xff] %v693_v30 }
 0x13e   : > { %713 = vst [vmem:[#allocation2 + $0x60] sm:$0xff] %v697_v31 }
 0x13f   : > { %702 = vst [vmem:[#allocation2] sm:$0xff] %v686_v34 }
 0x140   : > { %706 = vst [vmem:[#allocation2 + $0x68] sm:$0xff] %v690_v35 }
 0x142   : > { %v667_v40 = vpop.f32.mrf.mxu2  ;;  %v677_v41 = vpop.f32.mrf.mxu3 }
 0x143   : > { %v694_v42 = vadd.f32 %v667_v40, %v501_v36  ;;  %v698_v43 = vadd.f32 %v677_v41, %v505_v37  ;;  %v650_v44 = vpop.f32.mrf.mxu0  ;;  %v660_v45 = vpop.f32.mrf.mxu1 }
 0x144   : > { %v687_v46 = vadd.f32 %v650_v44, %v494_v38  ;;  %v691_v47 = vadd.f32 %v660_v45, %v498_v39 }
 0x145   : > { %710 = vst [vmem:[#allocation2 + $0x20] sm:$0xff] %v694_v42 }
 0x146   : > { %714 = vst [vmem:[#allocation2 + $0x70] sm:$0xff] %v698_v43 }
 0x147   : > { %703 = vst [vmem:[#allocation2 + $0x58] sm:$0xff] %v687_v46 }
 0x148   : > { %707 = vst [vmem:[#allocation2 + $0x8] sm:$0xff] %v691_v47 }
 0x14a   : > { %v670_v52 = vpop.f32.mrf.mxu2  ;;  %v680_v53 = vpop.f32.mrf.mxu3 }
 0x14b   : > { %v695_v54 = vadd.f32 %v670_v52, %v502_v48  ;;  %v699_v55 = vadd.f32 %v680_v53, %v506_v49  ;;  %v652_v56 = vpop.f32.mrf.mxu0  ;;  %v662_v57 = vpop.f32.mrf.mxu1 }
 0x14c   : > { %v688_v58 = vadd.f32 %v652_v56, %v495_v50  ;;  %v692_v59 = vadd.f32 %v662_v57, %v499_v51 }
 0x14d   : > { %711 = vst [vmem:[#allocation2 + $0x10] sm:$0xff] %v695_v54 }
 0x14e   : > { %715 = vst [vmem:[#allocation2 + $0x78] sm:$0xff] %v699_v55 }
 0x14f   : > { %704 = vst [vmem:[#allocation2 + $0x18] sm:$0xff] %v688_v58 }
 0x150   : > { %708 = vst [vmem:[#allocation2 + $0x48] sm:$0xff] %v692_v59 }
 0x152   : > { %v672_v62 = vpop.f32.mrf.mxu2  ;;  %v682_v63 = vpop.f32.mrf.mxu3  ;;  %720 = sbr.rel (%p1433_p0) target bundleno = 573 (0x23d), region = 76 }
 0x153   : > { %v696_v0 = vadd.f32 %v672_v62, %v503_v60  ;;  %v700_v1 = vadd.f32 %v682_v63, %v507_v61 }
 0x155   : > { %712 = vst [vmem:[#allocation2 + $0x38] sm:$0xff] %v696_v0 }
 0x156   : > { %716 = vst [vmem:[#allocation2 + $0x28] sm:$0xff] %v700_v1 }
 0x157   : > { %v1579_v2 = vld [vmem:[#allocation12 + $0x38] sm:$0xff]  ;;  %v1578_v4 = vld [vmem:[#allocation12 + $0x30] sm:$0xff]  ;;  %v1577_v6 = vld [vmem:[#allocation12 + $0x28] sm:$0xff] }
 0x158   : > { %v1563_v3 = vld [vmem:[#allocation10 + $0x38] sm:$0xff]  ;;  %889 = vmatpush.bf16.msra.mxu0 %v1579_v2  ;;  %1606 = vmatpush.bf16.msra.mxu2 %v1579_v2  ;;  %v1562_v5 = vld [vmem:[#allocation10 + $0x30] sm:$0xff]  ;;  %v1561_v7 = vld [vmem:[#allocation10 + $0x28] sm:$0xff] }
 0x159   : > { %986 = vmatpush.bf16.msra.mxu1 %v1563_v3  ;;  %1614 = vmatpush.bf16.msra.mxu3 %v1563_v3  ;;  %v1576_v8 = vld [vmem:[#allocation12 + $0x20] sm:$0xff]  ;;  %v1575_v10 = vld [vmem:[#allocation12 + $0x18] sm:$0xff]  ;;  %v1574_v12 = vld [vmem:[#allocation12 + $0x10] sm:$0xff] }
 0x15a   : > { %v1560_v9 = vld [vmem:[#allocation10 + $0x20] sm:$0xff]  ;;  %v1559_v11 = vld [vmem:[#allocation10 + $0x18] sm:$0xff]  ;;  %v1558_v13 = vld [vmem:[#allocation10 + $0x10] sm:$0xff] }
 0x15b   : > { %v1573_v14 = vld [vmem:[#allocation12 + $0x8] sm:$0xff]  ;;  %v1572_v16 = vld [vmem:[#allocation12] sm:$0xff]  ;;  %v721_v18 = vld [vmem:[#allocation2 + $0x30] sm:$0xff] }
 0x15c   : > { %890 = vmatpush.bf16.msra.mxu0 %v1578_v4  ;;  %1607 = vmatpush.bf16.msra.mxu2 %v1578_v4  ;;  %v1557_v15 = vld [vmem:[#allocation10 + $0x8] sm:$0xff]  ;;  %v1556_v17 = vld [vmem:[#allocation10] sm:$0xff]  ;;  %v723_v26 = vld [vmem:[#allocation2 + $0x58] sm:$0xff] }
 0x15d   : > { %987 = vmatpush.bf16.msra.mxu1 %v1562_v5  ;;  %1615 = vmatpush.bf16.msra.mxu3 %v1562_v5  ;;  %v722_v19 = vld [vmem:[#allocation2] sm:$0xff]  ;;  %v724_v27 = vld [vmem:[#allocation2 + $0x18] sm:$0xff]  ;;  %v731_v28 = vld [vmem:[#allocation2 + $0x10] sm:$0xff] }
 0x15e   : > { %v729_v20 = vld [vmem:[#allocation2 + $0x40] sm:$0xff]  ;;  %v737_v24 = vpack.c.bf16 %v722_v19, %v721_v18  ;;  %v732_v29 = vld [vmem:[#allocation2 + $0x38] sm:$0xff]  ;;  %v1565_v30 = vld [vmem:[%s2398_s25 + $0x8] sm:$0xff]  ;;  %v738_v32 = vpack.c.bf16 %v724_v27, %v723_v26 }
 0x15f   : > { %v730_v21 = vld [vmem:[#allocation2 + $0x20] sm:$0xff]  ;;  %v1569_v31 = vld [vmem:[%s2398_s25 + $0x28] sm:$0xff]  ;;  %v742_v33 = vpack.c.bf16 %v732_v29, %v731_v28  ;;  %v725_v34 = vld [vmem:[#allocation2 + $0x50] sm:$0xff] }
 0x160   : > { %891 = vmatpush.bf16.msra.mxu0 %v1577_v6  ;;  %1608 = vmatpush.bf16.msra.mxu2 %v1577_v6  ;;  %v1564_v22 = vld [vmem:[%s2398_s25] sm:$0xff]  ;;  %v741_v25 = vpack.c.bf16 %v730_v21, %v729_v20  ;;  %v726_v35 = vld [vmem:[#allocation2 + $0x68] sm:$0xff]  ;;  %v734_v37 = vld [vmem:[#allocation2 + $0x70] sm:$0xff] }
 0x161   : > { %988 = vmatpush.bf16.msra.mxu1 %v1561_v7  ;;  %1616 = vmatpush.bf16.msra.mxu3 %v1561_v7  ;;  %v1568_v23 = vld [vmem:[%s2398_s25 + $0x20] sm:$0xff]  ;;  %v1566_v38 = vld [vmem:[%s2398_s25 + $0x10] sm:$0xff]  ;;  %v739_v40 = vpack.c.bf16 %v726_v35, %v725_v34  ;;  %v727_v42 = vld [vmem:[#allocation2 + $0x8] sm:$0xff] }
 0x162   : > { %v733_v36 = vld [vmem:[#allocation2 + $0x60] sm:$0xff]  ;;  %v1570_v39 = vld [vmem:[%s2398_s25 + $0x30] sm:$0xff]  ;;  %v728_v43 = vld [vmem:[#allocation2 + $0x48] sm:$0xff] }
 0x163   : > { %v743_v41 = vpack.c.bf16 %v734_v37, %v733_v36  ;;  %v735_v44 = vld [vmem:[#allocation2 + $0x78] sm:$0xff]  ;;  %v736_v45 = vld [vmem:[#allocation2 + $0x28] sm:$0xff]  ;;  %v740_v48 = vpack.c.bf16 %v728_v43, %v727_v42  ;;  %v2442_v51 = vld [vmem:[%s2597_s8] ss:$0 sm:$0xff] }
 0x164   : > { %892 = vmatpush.bf16.msra.mxu0 %v1576_v8  ;;  %1609 = vmatpush.bf16.msra.mxu2 %v1576_v8  ;;  %v1567_v46 = vld [vmem:[%s2398_s25 + $0x18] sm:$0xff]  ;;  %v744_v49 = vpack.c.bf16 %v736_v45, %v735_v44  ;;  %v1071_v55 = vld [vmem:[#allocation3 + $0x28] sm:$0xff]  ;;  %v1079_v1 = vld [vmem:[#allocation3 + $0x20] sm:$0xff] }
 0x165   : > { %989 = vmatpush.bf16.msra.mxu1 %v1560_v9  ;;  %1617 = vmatpush.bf16.msra.mxu3 %v1560_v9  ;;  %v1571_v47 = vld [vmem:[%s2398_s25 + $0x38] sm:$0xff]  ;;  %v1072_v4 = vld [vmem:[#allocation3 + $0x68] sm:$0xff]  ;;  %v1073_v18 = vld [vmem:[#allocation3 + $0x10] sm:$0xff] }
 0x166   : > { %v1081_v29 = vld [vmem:[#allocation3 + $0x18] sm:$0xff] }
 0x167   : > { %v1082_v43 = vld [vmem:[#allocation3 + $0x58] sm:$0xff] }
 0x168   : > { %893 = vmatpush.bf16.msra.mxu0 %v1575_v10  ;;  %1610 = vmatpush.bf16.msra.mxu2 %v1575_v10 }
 0x169   : > { %990 = vmatpush.bf16.msra.mxu1 %v1559_v11  ;;  %1618 = vmatpush.bf16.msra.mxu3 %v1559_v11 }
 0x16c   : > { %894 = vmatpush.bf16.msra.mxu0 %v1574_v12  ;;  %1611 = vmatpush.bf16.msra.mxu2 %v1574_v12 }
 0x16d   : > { %991 = vmatpush.bf16.msra.mxu1 %v1558_v13  ;;  %1619 = vmatpush.bf16.msra.mxu3 %v1558_v13 }
 0x170   : > { %895 = vmatpush.bf16.msra.mxu0 %v1573_v14  ;;  %1612 = vmatpush.bf16.msra.mxu2 %v1573_v14 }
 0x171   : > { %992 = vmatpush.bf16.msra.mxu1 %v1557_v15  ;;  %1620 = vmatpush.bf16.msra.mxu3 %v1557_v15  ;;  %v1080_v15 = vld [vmem:[#allocation3 + $0x78] sm:$0xff] }
 0x174   : > { %896 = vmatpush.bf16.msra.mxu0 %v1572_v16  ;;  %1613 = vmatpush.bf16.msra.mxu2 %v1572_v16 }
 0x175   : > { %993 = vmatpush.bf16.msra.mxu1 %v1556_v17  ;;  %1621 = vmatpush.bf16.msra.mxu3 %v1556_v17 }
 0x177   : > { %897 = vmatmul.bf16.vlgmr.msra.gmra.mxu0 %v1564_v22  ;;  %917 = vmatmul.bf16.vlgmr.msra.gmra.mxu2 %v1568_v23 }
 0x178   : > { %994 = vmatmul.bf16.vlgmr.msra.gmra.mxu1 %v737_v24  ;;  %1014 = vmatmul.bf16.vlgmr.msra.gmra.mxu3 %v741_v25 }
 0x187   : > { %902 = vmatmul.bf16.gmra.mxu0 %v1565_v30  ;;  %922 = vmatmul.bf16.gmra.mxu2 %v1569_v31 }
 0x188   : > { %999 = vmatmul.bf16.gmra.mxu1 %v738_v32  ;;  %1019 = vmatmul.bf16.gmra.mxu3 %v742_v33  ;;  %v1074_v32 = vld [vmem:[#allocation3 + $0x40] sm:$0xff] }
 0x197   : > { %907 = vmatmul.bf16.gmra.mxu0 %v1566_v38  ;;  %927 = vmatmul.bf16.gmra.mxu2 %v1570_v39 }
 0x198   : > { %1004 = vmatmul.bf16.gmra.mxu1 %v739_v40  ;;  %1024 = vmatmul.bf16.gmra.mxu3 %v743_v41 }
 0x1a7   : > { %912 = vmatmul.bf16.gmra.mxu0 %v1567_v46  ;;  %932 = vmatmul.bf16.gmra.mxu2 %v1571_v47  ;;  %v1075_v46 = vld [vmem:[#allocation3 + $0x48] sm:$0xff] }
 0x1a8   : > { %1009 = vmatmul.bf16.gmra.mxu1 %v740_v48  ;;  %1029 = vmatmul.bf16.gmra.mxu3 %v744_v49 }
 0x1f4   : > { %v898_v50 = vpop.f32.mrf.mxu0 }
 0x1f5   : > { %v995_v52 = vpop.f32.mrf.mxu1 }
 0x1f6   : > { %v996_v53 = vadd.f32 %v995_v52, %v898_v50 }
 0x1f8   : > { %v1039_v54 = vadd.f32 %v2442_v51, %v996_v53 }
 0x1fa   : > { %v1055_v56 = vmax.f32 %v1039_v54, 0.0  ;;  %v918_v57 = vpop.f32.mrf.mxu2 }
 0x1fb   : > { %v1015_v58 = vpop.f32.mrf.mxu3 }
 0x1fc   : > { %v1087_v59 = vadd.f32 %v1071_v55, %v1055_v56  ;;  %v1016_v60 = vadd.f32 %v1015_v58, %v918_v57  ;;  %v900_v61 = vpop.f32.mrf.mxu0  ;;  %v1083_v58 = vld [vmem:[#allocation3] sm:$0xff] }
 0x1fd   : > { %v997_v62 = vpop.f32.mrf.mxu1 }
 0x1fe   : > { %1103 = vst [vmem:[#allocation3 + $0x28] sm:$0xff] %v1087_v59  ;;  %v1047_v63 = vadd.f32 %v2442_v51, %v1016_v60  ;;  %v998_v0 = vadd.f32 %v997_v62, %v900_v61  ;;  %v1076_v61 = vld [vmem:[#allocation3 + $0x30] sm:$0xff] }
 0x200   : > { %v1063_v2 = vmax.f32 %v1047_v63, 0.0  ;;  %v1040_v3 = vadd.f32 %v2442_v51, %v998_v0 }
 0x202   : > { %v1095_v5 = vadd.f32 %v1079_v1, %v1063_v2  ;;  %v1056_v6 = vmax.f32 %v1040_v3, 0.0  ;;  %v920_v7 = vpop.f32.mrf.mxu2 }
 0x203   : > { %v1017_v8 = vpop.f32.mrf.mxu3 }
 0x204   : > { %1111 = vst [vmem:[#allocation3 + $0x20] sm:$0xff] %v1095_v5  ;;  %v1088_v9 = vadd.f32 %v1072_v4, %v1056_v6  ;;  %v1018_v10 = vadd.f32 %v1017_v8, %v920_v7  ;;  %v903_v11 = vpop.f32.mrf.mxu0  ;;  %v1084_v8 = vld [vmem:[#allocation3 + $0x8] sm:$0xff] }
 0x205   : > { %v1000_v12 = vpop.f32.mrf.mxu1 }
 0x206   : > { %1104 = vst [vmem:[#allocation3 + $0x68] sm:$0xff] %v1088_v9  ;;  %v1048_v13 = vadd.f32 %v2442_v51, %v1018_v10  ;;  %v1001_v14 = vadd.f32 %v1000_v12, %v903_v11  ;;  %v1077_v11 = vld [vmem:[#allocation3 + $0x70] sm:$0xff] }
 0x208   : > { %v1064_v16 = vmax.f32 %v1048_v13, 0.0  ;;  %v1041_v17 = vadd.f32 %v2442_v51, %v1001_v14 }
 0x20a   : > { %v1096_v19 = vadd.f32 %v1080_v15, %v1064_v16  ;;  %v1057_v20 = vmax.f32 %v1041_v17, 0.0  ;;  %v923_v21 = vpop.f32.mrf.mxu2 }
 0x20b   : > { %v1020_v22 = vpop.f32.mrf.mxu3 }
 0x20c   : > { %1112 = vst [vmem:[#allocation3 + $0x78] sm:$0xff] %v1096_v19  ;;  %v1089_v23 = vadd.f32 %v1073_v18, %v1057_v20  ;;  %v1021_v24 = vadd.f32 %v1020_v22, %v923_v21  ;;  %v905_v25 = vpop.f32.mrf.mxu0  ;;  %v1085_v22 = vld [vmem:[#allocation3 + $0x60] sm:$0xff] }
 0x20d   : > { %v1002_v26 = vpop.f32.mrf.mxu1 }
 0x20e   : > { %1105 = vst [vmem:[#allocation3 + $0x10] sm:$0xff] %v1089_v23  ;;  %v1049_v27 = vadd.f32 %v2442_v51, %v1021_v24  ;;  %v1003_v28 = vadd.f32 %v1002_v26, %v905_v25  ;;  %v1078_v25 = vld [vmem:[#allocation3 + $0x38] sm:$0xff] }
 0x210   : > { %v1065_v30 = vmax.f32 %v1049_v27, 0.0  ;;  %v1042_v31 = vadd.f32 %v2442_v51, %v1003_v28 }
 0x212   : > { %v1097_v33 = vadd.f32 %v1081_v29, %v1065_v30  ;;  %v1058_v34 = vmax.f32 %v1042_v31, 0.0  ;;  %v925_v35 = vpop.f32.mrf.mxu2 }
 0x213   : > { %v1022_v36 = vpop.f32.mrf.mxu3 }
 0x214   : > { %1113 = vst [vmem:[#allocation3 + $0x18] sm:$0xff] %v1097_v33  ;;  %v1090_v37 = vadd.f32 %v1074_v32, %v1058_v34  ;;  %v1023_v38 = vadd.f32 %v1022_v36, %v925_v35  ;;  %v908_v39 = vpop.f32.mrf.mxu0  ;;  %v1086_v33 = vld [vmem:[#allocation3 + $0x50] sm:$0xff] }
 0x215   : > { %v1005_v40 = vpop.f32.mrf.mxu1 }
 0x216   : > { %1106 = vst [vmem:[#allocation3 + $0x40] sm:$0xff] %v1090_v37  ;;  %v1050_v41 = vadd.f32 %v2442_v51, %v1023_v38  ;;  %v1006_v42 = vadd.f32 %v1005_v40, %v908_v39 }
 0x218   : > { %v1066_v44 = vmax.f32 %v1050_v41, 0.0  ;;  %v1043_v45 = vadd.f32 %v2442_v51, %v1006_v42 }
 0x21a   : > { %v1098_v47 = vadd.f32 %v1082_v43, %v1066_v44  ;;  %v1059_v48 = vmax.f32 %v1043_v45, 0.0  ;;  %v928_v49 = vpop.f32.mrf.mxu2 }
 0x21b   : > { %v1025_v50 = vpop.f32.mrf.mxu3 }
 0x21c   : > { %1114 = vst [vmem:[#allocation3 + $0x58] sm:$0xff] %v1098_v47  ;;  %v1091_v52 = vadd.f32 %v1075_v46, %v1059_v48  ;;  %v1026_v53 = vadd.f32 %v1025_v50, %v928_v49  ;;  %v910_v54 = vpop.f32.mrf.mxu0 }
 0x21d   : > { %v1007_v55 = vpop.f32.mrf.mxu1 }
 0x21e   : > { %1107 = vst [vmem:[#allocation3 + $0x48] sm:$0xff] %v1091_v52  ;;  %v1051_v56 = vadd.f32 %v2442_v51, %v1026_v53  ;;  %v1008_v57 = vadd.f32 %v1007_v55, %v910_v54 }
 0x220   : > { %v1067_v59 = vmax.f32 %v1051_v56, 0.0  ;;  %v1044_v60 = vadd.f32 %v2442_v51, %v1008_v57 }
 0x222   : > { %v1099_v62 = vadd.f32 %v1083_v58, %v1067_v59  ;;  %v1060_v63 = vmax.f32 %v1044_v60, 0.0  ;;  %v930_v0 = vpop.f32.mrf.mxu2 }
 0x223   : > { %v1027_v1 = vpop.f32.mrf.mxu3 }
 0x224   : > { %1115 = vst [vmem:[#allocation3] sm:$0xff] %v1099_v62  ;;  %v1092_v2 = vadd.f32 %v1076_v61, %v1060_v63  ;;  %v1028_v3 = vadd.f32 %v1027_v1, %v930_v0  ;;  %v913_v4 = vpop.f32.mrf.mxu0 }
 0x225   : > { %v1010_v5 = vpop.f32.mrf.mxu1 }
 0x226   : > { %1108 = vst [vmem:[#allocation3 + $0x30] sm:$0xff] %v1092_v2  ;;  %v1052_v6 = vadd.f32 %v2442_v51, %v1028_v3  ;;  %v1011_v7 = vadd.f32 %v1010_v5, %v913_v4 }
 0x228   : > { %v1068_v9 = vmax.f32 %v1052_v6, 0.0  ;;  %v1045_v10 = vadd.f32 %v2442_v51, %v1011_v7 }
 0x22a   : > { %v1100_v12 = vadd.f32 %v1084_v8, %v1068_v9  ;;  %v1061_v13 = vmax.f32 %v1045_v10, 0.0  ;;  %v933_v14 = vpop.f32.mrf.mxu2 }
 0x22b   : > { %v1030_v15 = vpop.f32.mrf.mxu3 }
 0x22c   : > { %1116 = vst [vmem:[#allocation3 + $0x8] sm:$0xff] %v1100_v12  ;;  %v1093_v16 = vadd.f32 %v1077_v11, %v1061_v13  ;;  %v1031_v17 = vadd.f32 %v1030_v15, %v933_v14  ;;  %v915_v18 = vpop.f32.mrf.mxu0 }
 0x22d   : > { %v1012_v19 = vpop.f32.mrf.mxu1 }
 0x22e   : > { %1109 = vst [vmem:[#allocation3 + $0x70] sm:$0xff] %v1093_v16  ;;  %v1053_v20 = vadd.f32 %v2442_v51, %v1031_v17  ;;  %v1013_v21 = vadd.f32 %v1012_v19, %v915_v18 }
 0x230   : > { %v1069_v23 = vmax.f32 %v1053_v20, 0.0  ;;  %v1046_v24 = vadd.f32 %v2442_v51, %v1013_v21 }
 0x232   : > { %v1101_v26 = vadd.f32 %v1085_v22, %v1069_v23  ;;  %v1062_v27 = vmax.f32 %v1046_v24, 0.0  ;;  %v935_v28 = vpop.f32.mrf.mxu2 }
 0x233   : > { %v1032_v29 = vpop.f32.mrf.mxu3 }
 0x234   : > { %1117 = vst [vmem:[#allocation3 + $0x60] sm:$0xff] %v1101_v26  ;;  %v1094_v30 = vadd.f32 %v1078_v25, %v1062_v27  ;;  %v1033_v31 = vadd.f32 %v1032_v29, %v935_v28 }
 0x236   : > { %1110 = vst [vmem:[#allocation3 + $0x38] sm:$0xff] %v1094_v30  ;;  %v1054_v32 = vadd.f32 %v2442_v51, %v1033_v31 }
 0x238   : > { %v1070_v34 = vmax.f32 %v1054_v32, 0.0 }
 0x23a   : > { %v1102_v35 = vadd.f32 %v1086_v33, %v1070_v34 }
 0x23c   : > { %1118 = vst [vmem:[#allocation3 + $0x50] sm:$0xff] %v1102_v35 }
 0x23d PF: > { %1122 = sbr.rel (!%p717_p8) target bundleno = 590 (0x24e), region = 80  ;;  %v1123_v36 = vld [vmem:[#allocation3 + $0x28] sm:$0xff] (%p717_p8)  ;;  %v1125_v38 = vld [vmem:[#allocation3 + $0x10] sm:$0xff] (%p717_p8)  ;;  %v1126_v51 = vld [vmem:[#allocation3 + $0x40] sm:$0xff] (%p717_p8) }
 0x23e   : > { %v1124_v37 = vld [vmem:[#allocation3 + $0x68] sm:$0xff] (%p717_p8)  ;;  %1139 = vst [vmem:[%s2410_s13] sm:$0xff] (%p717_p8), %v1123_v36  ;;  %v1128_v40 = vld [vmem:[#allocation3 + $0x30] sm:$0xff] (%p717_p8)  ;;  %v1130_v42 = vld [vmem:[#allocation3 + $0x38] sm:$0xff] (%p717_p8) }
 0x23f   : > { %1140 = vst [vmem:[%s2410_s13 + $0x8] sm:$0xff] (%p717_p8), %v1124_v37  ;;  %v1127_v39 = vld [vmem:[#allocation3 + $0x48] sm:$0xff] (%p717_p8)  ;;  %v1129_v41 = vld [vmem:[#allocation3 + $0x70] sm:$0xff] (%p717_p8)  ;;  %v1131_v43 = vld [vmem:[#allocation3 + $0x20] sm:$0xff] (%p717_p8) }
 0x240   : > { %1141 = vst [vmem:[%s2410_s13 + $0x10] sm:$0xff] (%p717_p8), %v1125_v38  ;;  %v1132_v44 = vld [vmem:[#allocation3 + $0x78] sm:$0xff] (%p717_p8)  ;;  %v1135_v47 = vld [vmem:[#allocation3] sm:$0xff] (%p717_p8)  ;;  %v1136_v48 = vld [vmem:[#allocation3 + $0x8] sm:$0xff] (%p717_p8) }
 0x241   : > { %1142 = vst [vmem:[%s2410_s13 + $0x18] sm:$0xff] (%p717_p8), %v1126_v51  ;;  %v1133_v45 = vld [vmem:[#allocation3 + $0x18] sm:$0xff] (%p717_p8)  ;;  %v1137_v49 = vld [vmem:[#allocation3 + $0x60] sm:$0xff] (%p717_p8) }
 0x242   : > { %1143 = vst [vmem:[%s2410_s13 + $0x20] sm:$0xff] %v1127_v39  ;;  %v1134_v46 = vld [vmem:[#allocation3 + $0x58] sm:$0xff] }
 0x243   : > { %1144 = vst [vmem:[%s2410_s13 + $0x28] sm:$0xff] %v1128_v40  ;;  %v1138_v50 = vld [vmem:[#allocation3 + $0x50] sm:$0xff] }
 0x244   : > { %1145 = vst [vmem:[%s2410_s13 + $0x30] sm:$0xff] %v1129_v41 }
 0x245   : > { %1146 = vst [vmem:[%s2410_s13 + $0x38] sm:$0xff] %v1130_v42 }
 0x246   : > { %1147 = vst [vmem:[%s2410_s13 + $0x40] sm:$0xff] %v1131_v43 }
 0x247   : > { %1148 = vst [vmem:[%s2410_s13 + $0x48] sm:$0xff] %v1132_v44 }
 0x248   : > { %1149 = vst [vmem:[%s2410_s13 + $0x50] sm:$0xff] %v1133_v45 }
 0x249   : > { %1150 = vst [vmem:[%s2410_s13 + $0x58] sm:$0xff] %v1134_v46 }
 0x24a   : > { %1151 = vst [vmem:[%s2410_s13 + $0x60] sm:$0xff] %v1135_v47 }
 0x24b   : > { %1152 = vst [vmem:[%s2410_s13 + $0x68] sm:$0xff] %v1136_v48 }
 0x24c   : > { %1153 = vst [vmem:[%s2410_s13 + $0x70] sm:$0xff] %v1137_v49 }
 0x24d   : > { %1154 = vst [vmem:[%s2410_s13 + $0x78] sm:$0xff] %v1138_v50 }
 0x24e PF: > { %s2599_s7 = sld [smem:[#allocation21_spill]]  ;;  %s1168_s16 = sshll.u32 %s2410_s13, 4  ;;  %s1169_s16 = int_to_ptr.vmem [resolvable:$true] %s1168_s16 }
 0x24f   : > { %s2600_s1 = sld [smem:[#allocation32_spill]]  ;;  %s1156_s25 = scalar_lea.sflag [#allocation6], %s2395_s3 }
 0x254   : > { %s1581_s12 = sshll.u32 %s2599_s7, 7 }
 0x255   : > { %s1167_s15 = scalar_lea.hbm %s2600_s1, %s1581_s12  ;;  %s1957_s24 = scalar_lea.hbm %s2600_s1, 256 }
 0x256   : > { %s1170_s5 = sshll.u32 %s1167_s15, 4  ;;  %s1171_s5 = int_to_ptr.hbm [resolvable:$true] %s1170_s5 }
 0x257   : > { %s1951_s20 = sshra.s32 %s1171_s5, 4  ;;  %s1952_s20 = int_to_ptr.hbm [resolvable:$true] %s1951_s20 }
 0x258   : > { %s1953_s14 = scalar_lea.hbm %s1952_s20, 128  ;;  %p1958_p9 = scmp.lt.s32.totalorder %s1952_s20, %s2600_s1 }
 0x259   : > { %p1954_p3 = scmp.ne.s32.totalorder %s1952_s20, %s1953_s14  ;;  %p1959_p10 = scmp.lt.s32.totalorder %s1957_s24, %s1953_s14 }
 0x25b   : > { %p1955_p13 = pnand %p1954_p3, %p2350_p11  ;;  %p1960_p12 = por %p1959_p10, %p1958_p9 }
 0x25d   : > { %p1956_p7 = pneg %p1955_p13 }
 0x25f   : > { %p1961_p6 = pnand %p1960_p12, %p1956_p7 }
 0x261   : > { %1964 = shalt.err (!%p1961_p6)
}
 0x262   : > { %s2104_s3 = smov 128   ;;  %s2105_s13 = smov 8  }
 0x263   : > { %1636 = dma.vmem_to_hbm [thread:$0]  (%p2350_p11), %s1169_s16, 2048, %s1171_s5, %s1156_s25, %s2104_s3, %s2104_s3, %s2105_s13  }
 0x264 PF: > { %p1664_p2 = scmp.ge.s32.totalorder %s2095_s10, 2  ;;  %s1185_s30 = sand.u32 1, %s2043_s21  }
 0x265   : > { %s1186_s7 = scalar_lea.sflag [#allocation6], %s1185_s30 }
 0x266   : > { %p1656_p4 = pnand %p1664_p2, %p2361_p5 }
 0x268   : > { %p1657_p1 = pneg %p1656_p4 }
 0x26a   : > { %2038 = dma.done.wait (%p1657_p1), %s1186_s7, 2048  }
 0x26b   : > { %2040 = vsyncadd (%p1657_p1), %s1186_s7, 4294965248  ;;  %s26_s10 = sadd.s32 1, %s2095_s10   ;;  %s2602_s24 = sld [smem:[#allocation19_spill]] }
 0x26c   : > { %p2499_p8 = scmp.ge.s32.totalorder %s26_s10, 6   ;;  %s2603_s6 = sld [smem:[#allocation25_spill]] }
 0x26d   : > { %s2604_s19 = sld [smem:[#allocation26_spill]]  ;;  %s2608_s21 = smov %s2047_s22 }
 0x26e   : > { %s2605_s30 = sld [smem:[#allocation22_spill]]  ;;  %s2609_s22 = smov %s2051_s23 }
 0x26f   : > { %s2606_s8 = sld [smem:[#allocation23_spill]]  ;;  %s2610_s23 = smov %s2338_s27 }
 0x270   : > { %s2607_s17 = sld [smem:[#allocation24_spill]]  ;;  %s2611_s25 = smov %s2063_s26 }
 0x271   : > { %s2613_s27 = smov %s2071_s28  ;;  %s2614_s28 = smov %s2075_s29 }
 0x272   : > { %s2612_s26 = smov %s2603_s6  ;;  %s2616_s7 = smov %s2091_s9 }
 0x273   : > { %s2615_s29 = smov %s2604_s19  ;;  %25 = sbr.rel (!%p2499_p8) target bundleno = 20 (0x14), region = 142 }
 0x276   : > { %s2617_s9 = smov %s2607_s17 }
 0x278   :  { %1192 = vsyncpa [#allocation5], 1 }
 0x279   :  { %1194 = vsyncpa [#allocation5 + $0x1], 1 }
 0x27a   :  { %1195 = vsyncpa [#allocation8], 1 }
 0x27b   :  { %1197 = vsyncpa [#allocation8 + $0x1], 1 }
 0x27c   :  { %1198 = vsyncpa [#allocation11], 1 }
 0x27d   :  { %1199 = vsyncpa [#allocation6], 1 }
 0x27e   :  { %1201 = vsyncpa [#allocation6 + $0x1], 1 }

</bundles_post_ra>
